<compile_context>
chip_gen: v6e
topology: v6e:2x2x1
jax: 0.10.0
libtpu: 0.0.40
codegen_flags: <defaults>
</compile_context>

<pallas_src>
import jax
import jax.numpy as jnp
from jax.experimental import pallas as pl
from jax.experimental.pallas import tpu as pltpu

_LANE = 128
_SUBLANE = 8
# Per-grid-step VMEM budget for the double-buffered in+out tiles.  Conservative
# for v7x (32 MiB scoped default / 64 MiB physical); v5e/v6e have 128 MiB.
_VMEM_TILE_BUDGET = 20 * 1024 * 1024
_VMEM_LIMIT_BYTES = 32 * 1024 * 1024


def _round_up(n, m):
    return ((n + m - 1) // m) * m


# ---------------------------------------------------------------------------
# Static preprocessing of the membfuncs config (all params baked as floats).
# ---------------------------------------------------------------------------
def _build_static_spec(membfuncs):
    """Returns (specs, total_rows).

    specs : list of (function_name, n_memb, row_offset, per-membership params)
            where params are plain Python floats (1/sigma^2 and 1/a precomputed).
    """
    specs = []
    row_off = 0
    for mf in membfuncs:
        fn = mf["function"]
        m = int(mf["n_memb"])
        p = {k: [float(v) for v in d["value"]] for k, d in mf["params"].items()}
        if fn == "gaussian":
            pp = [(p["mu"][j], 1.0 / (p["sigma"][j] * p["sigma"][j])) for j in range(m)]
        elif fn == "bell":
            pp = [(p["c"][j], 1.0 / p["a"][j], p["b"][j]) for j in range(m)]
        elif fn == "sigmoid":
            pp = [(p["c"][j], p["gamma"][j]) for j in range(m)]
        else:
            raise ValueError(
                'Membership function must be either "gaussian", "bell", or "sigmoid".'
            )
        specs.append((fn, m, row_off, pp))
        row_off += m
    return specs, row_off


def _static_pow(base, b):
    """base ** b with a STATIC Python float exponent.

    Small integer exponents are lowered to repeated multiplies (exact for the
    non-negative bell base and removes 2 EUP transcendentals per element).
    """
    bi = int(round(b))
    if abs(b - bi) < 1e-12 and 1 <= bi <= 16:
        result = None
        acc = base
        e = bi
        while e:
            if e & 1:
                result = acc if result is None else result * acc
            e >>= 1
            if e:
                acc = acc * acc
        return result
    return jnp.power(base, b)  # non-integer exponent: fall back (matches reference)


# ---------------------------------------------------------------------------
# Fused kernel: all state variables, all membership functions, one output slab.
# ---------------------------------------------------------------------------
def _make_fused_kernel(specs):
    def kernel(x_ref, o_ref):
        # x_ref : (n_statevars, tile_rows, 128) f32 VMEM - batch on (sublane, lane).
        # o_ref : (total_rows,  tile_rows, 128) f32 VMEM.
        for sv_idx, (fn, m, row_off, pp) in enumerate(specs):   # static unroll
            xv = x_ref[sv_idx]                                   # (tile_rows, 128), dense
            if fn == "gaussian":
                # exp(-((x - mu) / sigma^2)^2)   (matches the PyTorch module)
                for j in range(m):
                    mu, inv_sig2 = pp[j]
                    z = (xv - mu) * inv_sig2
                    o_ref[row_off + j] = jnp.exp(-(z * z))
            elif fn == "bell":
                # 1 / (1 + ((x - c)^2 / a)^b)
                for j in range(m):
                    c, inv_a, b = pp[j]
                    d = xv - c
                    base = (d * d) * inv_a
                    o_ref[row_off + j] = 1.0 / (1.0 + _static_pow(base, b))
            else:  # sigmoid
                # sigmoid(gamma * (x - c)) == 0.5 * (tanh(0.5 * z) + 1)
                for j in range(m):
                    c, gamma = pp[j]
                    z = gamma * (xv - c)
                    o_ref[row_off + j] = 0.5 * (jnp.tanh(0.5 * z) + 1.0)
    return kernel


# ---------------------------------------------------------------------------
# Tile sizing: derive tile_rows (groups of 128 batch elements) from the VMEM
# budget; keep >= 2 grid steps when the batch is large enough (v7x megacore).
# ---------------------------------------------------------------------------
def _choose_tiling(batch, n_sv, total_rows):
    lane_rows = -(-batch // _LANE)                       # ceil(batch / 128)
    bytes_per_row = 2 * (n_sv + total_rows) * _LANE * 4  # double-buffered in+out
    max_tile_rows = max(
        _SUBLANE, (_VMEM_TILE_BUDGET // bytes_per_row) // _SUBLANE * _SUBLANE
    )
    if lane_rows <= max_tile_rows:
        if lane_rows >= 2 * _SUBLANE:
            # Split into >= 2 steps so both v7x TensorCores get work.
            tile_rows = _round_up(-(-lane_rows // 2), _SUBLANE)
        else:
            tile_rows = lane_rows            # single tile == full extent (OK)
    else:
        tile_rows = max_tile_rows
    padded_rows = _round_up(lane_rows, tile_rows)
    return tile_rows, padded_rows


# ---------------------------------------------------------------------------
# Packed forward: returns the (total_rows, B) slab (preferred for fusion with
# the ANFIS layer-2 consumer - avoids an extra HBM transpose pass).
# ---------------------------------------------------------------------------
def fuzzy_layer_forward_packed(x, membfuncs):
    n_sv = len(membfuncs)
    assert x.shape[1] == n_sv, (
        f"Number of State Variables in the input ({x.shape[1]}) and network "
        f"membership functions ({n_sv}) dont match."
    )
    specs, total_rows = _build_static_spec(membfuncs)
    batch = x.shape[0]
    tile_rows, padded_rows = _choose_tiling(batch, n_sv, total_rows)
    b_pad = padded_rows * _LANE

    x_t = x.astype(jnp.float32).T                          # (n_sv, B) - batch on lanes
    if b_pad != batch:
        x_t = jnp.pad(x_t, ((0, 0), (0, b_pad - batch)))
    x3 = x_t.reshape(n_sv, padded_rows, _LANE)             # batch on (sublane, lane)

    grid = (padded_rows // tile_rows,)
    out3 = pl.pallas_call(
        _make_fused_kernel(specs),
        out_shape=jax.ShapeDtypeStruct((total_rows, padded_rows, _LANE), jnp.float32),
        grid=grid,
        in_specs=[pl.BlockSpec((n_sv, tile_rows, _LANE), lambda r: (0, r, 0))],
        out_specs=pl.BlockSpec((total_rows, tile_rows, _LANE), lambda r: (0, r, 0)),
        compiler_params=pltpu.CompilerParams(
            dimension_semantics=("parallel",),             # shard batch over TCs (v7x)
            vmem_limit_bytes=_VMEM_LIMIT_BYTES,
        ),
    )(x3)

    packed = out3.reshape(total_rows, b_pad)[:, :batch]    # (total_rows, B)
    return packed, specs


# ---------------------------------------------------------------------------
# PyTorch-convention wrapper: list of (B, n_memb_i).
# NOTE: the transpose/slicing below is pure layout plumbing; performance-
# critical callers should consume fuzzy_layer_forward_packed() directly.
# ---------------------------------------------------------------------------
def fuzzy_layer_forward(x, membfuncs):
    packed, specs = fuzzy_layer_forward_packed(x, membfuncs)
    outputs = []
    for (_, m, off, _) in specs:
        outputs.append(packed[off : off + m].T)            # (B, m_i)
    return outputs


# ---------------------------------------------------------------------------
# Pure-JAX reference (mirrors the PyTorch math exactly) for correctness check.
# ---------------------------------------------------------------------------
def _reference(x, membfuncs):
    outs = []
    for i, mf in enumerate(membfuncs):
        xc = x[:, i : i + 1].astype(jnp.float32)
        p = {
            k: jnp.asarray(v["value"], jnp.float32).reshape(1, -1)
            for k, v in mf["params"].items()
        }
        if mf["function"] == "gaussian":
            outs.append(jnp.exp(-jnp.square((xc - p["mu"]) / jnp.square(p["sigma"]))))
        elif mf["function"] == "bell":
            outs.append(
                1.0 / (1.0 + jnp.power(jnp.square(xc - p["c"]) / p["a"], p["b"]))
            )
        else:
            outs.append(1.0 / (1.0 + jnp.exp(-(p["gamma"] * (xc - p["c"])))))
    return outs


if __name__ == "__main__":
    membfuncs = [
        {
            "function": "gaussian",
            "n_memb": 3,
            "params": {
                "mu": {"value": [-1.0, 0.0, 1.0], "trainable": True},
                "sigma": {"value": [1.0, 1.5, 2.0], "trainable": True},
            },
        },
        {
            "function": "bell",
            "n_memb": 3,
            "params": {
                "a": {"value": [1.0, 2.0, 0.5], "trainable": True},
                "b": {"value": [2.0, 1.0, 3.0], "trainable": True},
                "c": {"value": [-0.5, 0.0, 0.5], "trainable": True},
            },
        },
        {
            "function": "sigmoid",
            "n_memb": 2,
            "params": {
                "c": {"value": [-1.0, 1.0], "trainable": True},
                "gamma": {"value": [2.0, -1.5], "trainable": True},
            },
        },
    ]

    n_statevars = len(membfuncs)
    key = jax.random.PRNGKey(0)

    # Test a few batch sizes to exercise the single-tile, padded, and
    # multi-grid-step code paths.
    for batch in (8, 300, 2048):
        key, sub = jax.random.split(key)
        x = jax.random.normal(sub, (batch, n_statevars), dtype=jnp.float32)

        outs = fuzzy_layer_forward(x, membfuncs)
        outs = [jax.block_until_ready(o) for o in outs]

        refs = _reference(x, membfuncs)
        for o, r in zip(outs, refs):
            assert o.shape == r.shape, (o.shape, r.shape)
            assert jnp.allclose(o, r, atol=1e-5, rtol=1e-5), (
                f"mismatch vs reference (batch={batch})"
            )

    print("KERNEL_OK")
</pallas_src>

<mosaic_0001>
module attributes {stable_mosaic.version = 11 : i64} {
  func.func @kernel(%arg0: i32, %arg1: memref<3x1x128xf32, #tpu.memory_space<vmem>>, %arg2: memref<8x1x128xf32, #tpu.memory_space<vmem>>) attributes {dimension_semantics = [#tpu.dimension_semantics<parallel>], iteration_bounds = array<i64: 1>, scalar_prefetch = 0 : i64, scratch_operands = 0 : i64, tpu.core_type = #tpu.core_type<tc>, window_params = [{transform_indices = @transform_0, window_bounds = array<i64: 3, 1, 128>}, {transform_indices = @transform_1, window_bounds = array<i64: 8, 1, 128>}]} {
    %c0 = arith.constant 0 : index
    %c0_0 = arith.constant 0 : index
    %c0_1 = arith.constant 0 : index
    %0 = vector.load %arg1[%c0, %c0_0, %c0_1] : memref<3x1x128xf32, #tpu.memory_space<vmem>>, vector<1x1x128xf32>
    %1 = vector.shape_cast %0 : vector<1x1x128xf32> to vector<1x128xf32>
    %cst = arith.constant -1.000000e+00 : f32
    %2 = vector.broadcast %cst : f32 to vector<1x128xf32>
    %3 = arith.subf %1, %2 : vector<1x128xf32>
    %cst_2 = arith.constant 1.000000e+00 : f32
    %4 = vector.broadcast %cst_2 : f32 to vector<1x128xf32>
    %5 = arith.mulf %3, %4 : vector<1x128xf32>
    %6 = arith.mulf %5, %5 : vector<1x128xf32>
    %cst_3 = arith.constant 0.000000e+00 : f32
    %7 = vector.broadcast %cst_3 : f32 to vector<1x128xf32>
    %8 = arith.subf %7, %6 : vector<1x128xf32>
    %9 = math.exp %8 : vector<1x128xf32>
    %c0_4 = arith.constant 0 : index
    %c0_5 = arith.constant 0 : index
    %c0_6 = arith.constant 0 : index
    %10 = vector.load %arg2[%c0_4, %c0_5, %c0_6] : memref<8x1x128xf32, #tpu.memory_space<vmem>>, vector<1x1x128xf32>
    %11 = vector.shape_cast %10 : vector<1x1x128xf32> to vector<1x128xf32>
    %12 = vector.shape_cast %9 : vector<1x128xf32> to vector<1x1x128xf32>
    tpu.vector_store %arg2[%c0_4, %c0_5, %c0_6], %12 {strides = array<i32>} : memref<8x1x128xf32, #tpu.memory_space<vmem>>, vector<1x1x128xf32>,
    %cst_7 = arith.constant 0.000000e+00 : f32
    %13 = vector.broadcast %cst_7 : f32 to vector<1x128xf32>
    %14 = arith.subf %1, %13 : vector<1x128xf32>
    %cst_8 = arith.constant 0.444444448 : f32
    %15 = vector.broadcast %cst_8 : f32 to vector<1x128xf32>
    %16 = arith.mulf %14, %15 : vector<1x128xf32>
    %17 = arith.mulf %16, %16 : vector<1x128xf32>
    %cst_9 = arith.constant 0.000000e+00 : f32
    %18 = vector.broadcast %cst_9 : f32 to vector<1x128xf32>
    %19 = arith.subf %18, %17 : vector<1x128xf32>
    %20 = math.exp %19 : vector<1x128xf32>
    %c1 = arith.constant 1 : index
    %c0_10 = arith.constant 0 : index
    %c0_11 = arith.constant 0 : index
    %21 = vector.load %arg2[%c1, %c0_10, %c0_11] : memref<8x1x128xf32, #tpu.memory_space<vmem>>, vector<1x1x128xf32>
    %22 = vector.shape_cast %21 : vector<1x1x128xf32> to vector<1x128xf32>
    %23 = vector.shape_cast %20 : vector<1x128xf32> to vector<1x1x128xf32>
    tpu.vector_store %arg2[%c1, %c0_10, %c0_11], %23 {strides = array<i32>} : memref<8x1x128xf32, #tpu.memory_space<vmem>>, vector<1x1x128xf32>,
    %cst_12 = arith.constant 1.000000e+00 : f32
    %24 = vector.broadcast %cst_12 : f32 to vector<1x128xf32>
    %25 = arith.subf %1, %24 : vector<1x128xf32>
    %cst_13 = arith.constant 2.500000e-01 : f32
    %26 = vector.broadcast %cst_13 : f32 to vector<1x128xf32>
    %27 = arith.mulf %25, %26 : vector<1x128xf32>
    %28 = arith.mulf %27, %27 : vector<1x128xf32>
    %cst_14 = arith.constant 0.000000e+00 : f32
    %29 = vector.broadcast %cst_14 : f32 to vector<1x128xf32>
    %30 = arith.subf %29, %28 : vector<1x128xf32>
    %31 = math.exp %30 : vector<1x128xf32>
    %c2 = arith.constant 2 : index
    %c0_15 = arith.constant 0 : index
    %c0_16 = arith.constant 0 : index
    %32 = vector.load %arg2[%c2, %c0_15, %c0_16] : memref<8x1x128xf32, #tpu.memory_space<vmem>>, vector<1x1x128xf32>
    %33 = vector.shape_cast %32 : vector<1x1x128xf32> to vector<1x128xf32>
    %34 = vector.shape_cast %31 : vector<1x128xf32> to vector<1x1x128xf32>
    tpu.vector_store %arg2[%c2, %c0_15, %c0_16], %34 {strides = array<i32>} : memref<8x1x128xf32, #tpu.memory_space<vmem>>, vector<1x1x128xf32>,
    %c1_17 = arith.constant 1 : index
    %c0_18 = arith.constant 0 : index
    %c0_19 = arith.constant 0 : index
    %35 = vector.load %arg1[%c1_17, %c0_18, %c0_19] : memref<3x1x128xf32, #tpu.memory_space<vmem>>, vector<1x1x128xf32>
    %36 = vector.shape_cast %35 : vector<1x1x128xf32> to vector<1x128xf32>
    %cst_20 = arith.constant -5.000000e-01 : f32
    %37 = vector.broadcast %cst_20 : f32 to vector<1x128xf32>
    %38 = arith.subf %36, %37 : vector<1x128xf32>
    %39 = arith.mulf %38, %38 : vector<1x128xf32>
    %cst_21 = arith.constant 1.000000e+00 : f32
    %40 = vector.broadcast %cst_21 : f32 to vector<1x128xf32>
    %41 = arith.mulf %39, %40 : vector<1x128xf32>
    %42 = arith.mulf %41, %41 : vector<1x128xf32>
    %cst_22 = arith.constant 1.000000e+00 : f32
    %43 = vector.broadcast %cst_22 : f32 to vector<1x128xf32>
    %44 = arith.addf %43, %42 : vector<1x128xf32>
    %cst_23 = arith.constant 1.000000e+00 : f32
    %45 = vector.broadcast %cst_23 : f32 to vector<1x128xf32>
    %46 = arith.divf %45, %44 : vector<1x128xf32>
    %c3 = arith.constant 3 : index
    %c0_24 = arith.constant 0 : index
    %c0_25 = arith.constant 0 : index
    %47 = vector.load %arg2[%c3, %c0_24, %c0_25] : memref<8x1x128xf32, #tpu.memory_space<vmem>>, vector<1x1x128xf32>
    %48 = vector.shape_cast %47 : vector<1x1x128xf32> to vector<1x128xf32>
    %49 = vector.shape_cast %46 : vector<1x128xf32> to vector<1x1x128xf32>
    tpu.vector_store %arg2[%c3, %c0_24, %c0_25], %49 {strides = array<i32>} : memref<8x1x128xf32, #tpu.memory_space<vmem>>, vector<1x1x128xf32>,
    %cst_26 = arith.constant 0.000000e+00 : f32
    %50 = vector.broadcast %cst_26 : f32 to vector<1x128xf32>
    %51 = arith.subf %36, %50 : vector<1x128xf32>
    %52 = arith.mulf %51, %51 : vector<1x128xf32>
    %cst_27 = arith.constant 5.000000e-01 : f32
    %53 = vector.broadcast %cst_27 : f32 to vector<1x128xf32>
    %54 = arith.mulf %52, %53 : vector<1x128xf32>
    %cst_28 = arith.constant 1.000000e+00 : f32
    %55 = vector.broadcast %cst_28 : f32 to vector<1x128xf32>
    %56 = arith.addf %55, %54 : vector<1x128xf32>
    %cst_29 = arith.constant 1.000000e+00 : f32
    %57 = vector.broadcast %cst_29 : f32 to vector<1x128xf32>
    %58 = arith.divf %57, %56 : vector<1x128xf32>
    %c4 = arith.constant 4 : index
    %c0_30 = arith.constant 0 : index
    %c0_31 = arith.constant 0 : index
    %59 = vector.load %arg2[%c4, %c0_30, %c0_31] : memref<8x1x128xf32, #tpu.memory_space<vmem>>, vector<1x1x128xf32>
    %60 = vector.shape_cast %59 : vector<1x1x128xf32> to vector<1x128xf32>
    %61 = vector.shape_cast %58 : vector<1x128xf32> to vector<1x1x128xf32>
    tpu.vector_store %arg2[%c4, %c0_30, %c0_31], %61 {strides = array<i32>} : memref<8x1x128xf32, #tpu.memory_space<vmem>>, vector<1x1x128xf32>,
    %cst_32 = arith.constant 5.000000e-01 : f32
    %62 = vector.broadcast %cst_32 : f32 to vector<1x128xf32>
    %63 = arith.subf %36, %62 : vector<1x128xf32>
    %64 = arith.mulf %63, %63 : vector<1x128xf32>
    %cst_33 = arith.constant 2.000000e+00 : f32
    %65 = vector.broadcast %cst_33 : f32 to vector<1x128xf32>
    %66 = arith.mulf %64, %65 : vector<1x128xf32>
    %67 = arith.mulf %66, %66 : vector<1x128xf32>
    %68 = arith.mulf %66, %67 : vector<1x128xf32>
    %cst_34 = arith.constant 1.000000e+00 : f32
    %69 = vector.broadcast %cst_34 : f32 to vector<1x128xf32>
    %70 = arith.addf %69, %68 : vector<1x128xf32>
    %cst_35 = arith.constant 1.000000e+00 : f32
    %71 = vector.broadcast %cst_35 : f32 to vector<1x128xf32>
    %72 = arith.divf %71, %70 : vector<1x128xf32>
    %c5 = arith.constant 5 : index
    %c0_36 = arith.constant 0 : index
    %c0_37 = arith.constant 0 : index
    %73 = vector.load %arg2[%c5, %c0_36, %c0_37] : memref<8x1x128xf32, #tpu.memory_space<vmem>>, vector<1x1x128xf32>
    %74 = vector.shape_cast %73 : vector<1x1x128xf32> to vector<1x128xf32>
    %75 = vector.shape_cast %72 : vector<1x128xf32> to vector<1x1x128xf32>
    tpu.vector_store %arg2[%c5, %c0_36, %c0_37], %75 {strides = array<i32>} : memref<8x1x128xf32, #tpu.memory_space<vmem>>, vector<1x1x128xf32>,
    %c2_38 = arith.constant 2 : index
    %c0_39 = arith.constant 0 : index
    %c0_40 = arith.constant 0 : index
    %76 = vector.load %arg1[%c2_38, %c0_39, %c0_40] : memref<3x1x128xf32, #tpu.memory_space<vmem>>, vector<1x1x128xf32>
    %77 = vector.shape_cast %76 : vector<1x1x128xf32> to vector<1x128xf32>
    %cst_41 = arith.constant -1.000000e+00 : f32
    %78 = vector.broadcast %cst_41 : f32 to vector<1x128xf32>
    %79 = arith.subf %77, %78 : vector<1x128xf32>
    %cst_42 = arith.constant 2.000000e+00 : f32
    %80 = vector.broadcast %cst_42 : f32 to vector<1x128xf32>
    %81 = arith.mulf %80, %79 : vector<1x128xf32>
    %cst_43 = arith.constant 5.000000e-01 : f32
    %82 = vector.broadcast %cst_43 : f32 to vector<1x128xf32>
    %83 = arith.mulf %82, %81 : vector<1x128xf32>
    %84 = math.tanh %83 : vector<1x128xf32>
    %cst_44 = arith.constant 1.000000e+00 : f32
    %85 = vector.broadcast %cst_44 : f32 to vector<1x128xf32>
    %86 = arith.addf %84, %85 : vector<1x128xf32>
    %cst_45 = arith.constant 5.000000e-01 : f32
    %87 = vector.broadcast %cst_45 : f32 to vector<1x128xf32>
    %88 = arith.mulf %87, %86 : vector<1x128xf32>
    %c6 = arith.constant 6 : index
    %c0_46 = arith.constant 0 : index
    %c0_47 = arith.constant 0 : index
    %89 = vector.load %arg2[%c6, %c0_46, %c0_47] : memref<8x1x128xf32, #tpu.memory_space<vmem>>, vector<1x1x128xf32>
    %90 = vector.shape_cast %89 : vector<1x1x128xf32> to vector<1x128xf32>
    %91 = vector.shape_cast %88 : vector<1x128xf32> to vector<1x1x128xf32>
    tpu.vector_store %arg2[%c6, %c0_46, %c0_47], %91 {strides = array<i32>} : memref<8x1x128xf32, #tpu.memory_space<vmem>>, vector<1x1x128xf32>,
    %cst_48 = arith.constant 1.000000e+00 : f32
    %92 = vector.broadcast %cst_48 : f32 to vector<1x128xf32>
    %93 = arith.subf %77, %92 : vector<1x128xf32>
    %cst_49 = arith.constant -1.500000e+00 : f32
    %94 = vector.broadcast %cst_49 : f32 to vector<1x128xf32>
    %95 = arith.mulf %94, %93 : vector<1x128xf32>
    %cst_50 = arith.constant 5.000000e-01 : f32
    %96 = vector.broadcast %cst_50 : f32 to vector<1x128xf32>
    %97 = arith.mulf %96, %95 : vector<1x128xf32>
    %98 = math.tanh %97 : vector<1x128xf32>
    %cst_51 = arith.constant 1.000000e+00 : f32
    %99 = vector.broadcast %cst_51 : f32 to vector<1x128xf32>
    %100 = arith.addf %98, %99 : vector<1x128xf32>
    %cst_52 = arith.constant 5.000000e-01 : f32
    %101 = vector.broadcast %cst_52 : f32 to vector<1x128xf32>
    %102 = arith.mulf %101, %100 : vector<1x128xf32>
    %c7 = arith.constant 7 : index
    %c0_53 = arith.constant 0 : index
    %c0_54 = arith.constant 0 : index
    %103 = vector.load %arg2[%c7, %c0_53, %c0_54] : memref<8x1x128xf32, #tpu.memory_space<vmem>>, vector<1x1x128xf32>
    %104 = vector.shape_cast %103 : vector<1x1x128xf32> to vector<1x128xf32>
    %105 = vector.shape_cast %102 : vector<1x128xf32> to vector<1x1x128xf32>
    tpu.vector_store %arg2[%c7, %c0_53, %c0_54], %105 {strides = array<i32>} : memref<8x1x128xf32, #tpu.memory_space<vmem>>, vector<1x1x128xf32>,
    return
  }
  func.func @transform_0(%arg0: i32) -> (i32, i32, i32) {
    %c0_i32 = arith.constant 0 : i32
    %c0_i32_0 = arith.constant 0 : i32
    %c0_i32_1 = arith.constant 0 : i32
    return %c0_i32, %arg0, %c0_i32_0 : i32, i32, i32
  }
  func.func @transform_1(%arg0: i32) -> (i32, i32, i32) {
    %c0_i32 = arith.constant 0 : i32
    %c0_i32_0 = arith.constant 0 : i32
    %c0_i32_1 = arith.constant 0 : i32
    return %c0_i32, %arg0, %c0_i32_0 : i32, i32, i32
  }
}

</mosaic_0001>

<bundles_post_ra>
// kernel: tpu_custom_call.1
= control target key start
LH: loop header
LB: loop body
LE: loop exit
PB: predicated region body
PF: predicated region fallthrough
CT: control target
= control target key end

     0   :  { %6 = vsyncpa [#allocation3], 0  ;;  %s203_s0 = inlined_call_operand.hbm [shape: f32[3,1,128], index: 0, kind: input, shape index: {}]   ;;  %s204_s1 = inlined_call_operand.hbm [shape: f32[8,1,128], index: 1, kind: output, shape index: {}]  }
   0x1   :  { %7 = vsyncpa [#allocation4], 0  ;;  %s177_s6 = smov [#allocation2]  }
   0x2   :  { %s13_s7 = sshll.u32 %s177_s6, 4  ;;  %s14_s7 = int_to_ptr.vmem [resolvable:$true] %s13_s7 }
   0x3   :  { %s141_s8 = scalar_lea.vmem %s14_s7, 48  ;;  %s145_s9 = scalar_lea.vmem %s14_s7, 64 }
   0x4   :  { %p142_p0 = scmp.ne.s32.totalorder %s14_s7, %s141_s8  ;;  %p146_p1 = scmp.lt.s32.totalorder %s14_s7, %s14_s7 }
   0x5   :  { %p147_p2 = scmp.lt.s32.totalorder %s145_s9, %s141_s8 }
   0x7   :  { %p148_p3 = por %p147_p2, %p146_p1 }
   0x9   :  { %p149_p4 = pnand %p148_p3, %p142_p0 }
   0xb   :  { %152 = shalt.err (!%p149_p4)
}
   0xc   :  { %s178_s10 = smov 16   ;;  %s179_s11 = smov 1  }
   0xd   :  { %19 = dma.hbm_to_vmem [thread:$0]  %s203_s0, 48, %s14_s7, [#allocation3], %s178_s10, %s178_s10, %s179_s11  }
   0xe   :  { %173 = dma.done.wait [#allocation3], 48  }
   0xf   :  { %174 = vsyncadd [#allocation3], 4294967248  ;;  %v23_v0 = vld [vmem:[#allocation2] sm:$0x1]  ;;  %v46_v1 = vld [vmem:[#allocation2 + $0x1] sm:$0x1] }
  0x10   :  { %v73_v2 = vld [vmem:[#allocation2 + $0x2] sm:$0x1]  ;;  %v107_v3 = vadd.f32 1.0, %v23_v0  ;;  %v30_v4 = vmul.f32 0.44444445, %v23_v0  ;;  %v108_v5 = vadd.f32 -1.0, %v23_v0  ;;  %v55_v7 = vmul.f32 %v46_v1, %v46_v1 }
  0x11   :  { %v109_v6 = vadd.f32 0.5, %v46_v1  ;;  %v110_v8 = vadd.f32 -0.5, %v46_v1  ;;  %v111_v9 = vadd.f32 1.0, %v73_v2  ;;  %v112_v10 = vadd.f32 -1.0, %v73_v2  ;;  %s180_s0 = smov [#allocation5]  }
  0x12   :  { %v25_v11 = vmul.f32 %v107_v3, %v107_v3  ;;  %v31_v12 = vmul.f32 %v30_v4, %v30_v4  ;;  %v38_v13 = vmul.f32 0.25, %v108_v5  ;;  %v56_v15 = vmul.f32 0.5, %v55_v7  ;;  %s95_s14 = sshll.u32 %s180_s0, 4  ;;  %s96_s14 = int_to_ptr.vmem [resolvable:$true] %s95_s14 }
  0x13   :  { %v48_v14 = vmul.f32 %v109_v6, %v109_v6  ;;  %v63_v16 = vmul.f32 %v110_v8, %v110_v8  ;;  %v75_v17 = vmul.f32 2.0, %v111_v9  ;;  %v83_v27 = vmul.f32 -1.5, %v112_v10  ;;  %s153_s15 = scalar_lea.vmem %s96_s14, 128  ;;  %p158_p6 = scmp.lt.s32.totalorder %s96_s14, %s96_s14 }
  0x14   :  { %v26_v18 = vsub.f32 0.0, %v25_v11  ;;  %v32_v19 = vsub.f32 0.0, %v31_v12  ;;  %v39_v20 = vmul.f32 %v38_v13, %v38_v13  ;;  %v57_v22 = vadd.f32 1.0, %v56_v15  ;;  %p154_p5 = scmp.ne.s32.totalorder %s96_s14, %s153_s15  ;;  %p159_p7 = scmp.lt.s32.totalorder %s153_s15, %s153_s15 }
  0x15   :  { %v49_v21 = vmul.f32 %v48_v14, %v48_v14  ;;  %v64_v23 = vmul.f32 2.0, %v63_v16  ;;  %v76_v31 = vmul.f32 0.5, %v75_v17  ;;  %v84_v33 = vmul.f32 0.5, %v83_v27 }
  0x16   :  { %v27_v24 = vmul.f32 1.442695, %v26_v18  ;;  %v33_v25 = vmul.f32 1.442695, %v32_v19  ;;  %v40_v26 = vsub.f32 0.0, %v39_v20  ;;  %117 = vrcp.f32 %v57_v22  ;;  %p160_p8 = por %p159_p7, %p158_p6 }
  0x17   :  { %v50_v28 = vadd.f32 1.0, %v49_v21  ;;  %v65_v29 = vmul.f32 %v64_v23, %v64_v23 }
  0x18   :  { %119 = vpow2.f32 %v27_v24  ;;  %v41_v30 = vmul.f32 1.442695, %v40_v26  ;;  %p161_p9 = pnand %p160_p8, %p154_p5 }
  0x19   :  { %121 = vpow2.f32 %v33_v25  ;;  %v66_v32 = vmul.f32 %v65_v29, %v64_v23 }
  0x1a   :  { %123 = vpow2.f32 %v41_v30 }
  0x1b   :  { %125 = vrcp.f32 %v50_v28  ;;  %v67_v34 = vadd.f32 1.0, %v66_v32 }
  0x1c   :  { %127 = vtanh.f32 %v76_v31 }
  0x1d   :  { %129 = vrcp.f32 %v67_v34 }
  0x1e   :  { %131 = vtanh.f32 %v84_v33 }
  0x23   :  { %v118_v35 = vpop.eup %117 }
  0x24   :  { %61 = vst [vmem:[#allocation5 + $0x4] sm:$0x1] %v118_v35 }
  0x25   :  { %v120_v36 = vpop.eup %119 }
  0x26   :  { %v122_v37 = vpop.eup %121  ;;  %29 = vst [vmem:[#allocation5] sm:$0x1] %v120_v36 }
  0x27   :  { %v124_v38 = vpop.eup %123  ;;  %36 = vst [vmem:[#allocation5 + $0x1] sm:$0x1] %v122_v37 }
  0x28   :  { %v126_v39 = vpop.eup %125  ;;  %44 = vst [vmem:[#allocation5 + $0x2] sm:$0x1] %v124_v38 }
  0x29   :  { %v128_v40 = vpop.eup %127  ;;  %54 = vst [vmem:[#allocation5 + $0x3] sm:$0x1] %v126_v39 }
  0x2a   :  { %v130_v41 = vpop.eup %129  ;;  %v78_v42 = vadd.f32 1.0, %v128_v40 }
  0x2b   :  { %v132_v43 = vpop.eup %131  ;;  %71 = vst [vmem:[#allocation5 + $0x5] sm:$0x1] %v130_v41 }
  0x2c   :  { %v79_v44 = vmul.f32 0.5, %v78_v42  ;;  %v86_v45 = vadd.f32 1.0, %v132_v43 }
  0x2e   :  { %81 = vst [vmem:[#allocation5 + $0x6] sm:$0x1] %v79_v44  ;;  %v87_v46 = vmul.f32 0.5, %v86_v45 }
  0x30   :  { %89 = vst [vmem:[#allocation5 + $0x7] sm:$0x1] %v87_v46 }
  0x31   :  { %164 = shalt.err (!%p161_p9)
}
  0x32   :  { %101 = dma.vmem_to_hbm [thread:$0]  %s96_s14, 128, %s204_s1, [#allocation4], %s178_s10, %s178_s10, %s179_s11  }
  0x33   :  { %175 = dma.done.wait [#allocation4], 128  }
  0x34   :  { %176 = vsyncadd [#allocation4], 4294967168 }
  0x35   :  { %105 = vsyncpa [#allocation3], 1 }
  0x36   :  { %106 = vsyncpa [#allocation4], 1 }

</bundles_post_ra>
